<compile_context>
chip_gen: v7x
topology: tpu7x:2x2x1
jax: 0.10.0
libtpu: 0.0.40
codegen_flags: <defaults>
</compile_context>

<pallas_src>
import jax
import jax.numpy as jnp
from jax.experimental import pallas as pl
from jax.experimental.pallas import tpu as pltpu

_NEG_FILL = -1e30  # finite "minus infinity" for class-axis padding


def _round_up(x, m):
    return (x + m - 1) // m * m


def _lse_kernel(x_ref, lse_ref, m_ref, s_ref):
    """Grid step (i, j): row tile i, class tile j (reduction axis, streamed).

    m_ref / s_ref are (tn, 128) per-lane accumulators; the only cross-lane
    reduction happens once per row tile in the finalize branch.
    """
    j = pl.program_id(1)
    n_grp = x_ref.shape[-1] // 128

    @pl.when(j == 0)
    def _init():
        m_ref[...] = jnp.full_like(m_ref, -jnp.inf)
        s_ref[...] = jnp.zeros_like(s_ref)

    # Pass 1: per-lane max of this class tile (native dtype, vreg-aligned max).
    t_max = x_ref[:, 0:128]
    for g in range(1, n_grp):
        t_max = jnp.maximum(t_max, x_ref[:, g * 128:(g + 1) * 128])
    m_prev = m_ref[...]
    m_new = jnp.maximum(m_prev, t_max.astype(jnp.float32))        # (tn, 128)

    # Pass 2: rescale the running sum once per tile, then accumulate this
    # tile's exp contributions group by group (same-shape vreg ops only).
    s = s_ref[...] * jnp.exp(m_prev - m_new)                       # 0 on j == 0
    for g in range(n_grp):
        xg = x_ref[:, g * 128:(g + 1) * 128].astype(jnp.float32)
        s = s + jnp.exp(xg - m_new)
    s_ref[...] = s
    m_ref[...] = m_new

    @pl.when(j == pl.num_programs(1) - 1)
    def _finalize():
        m_lane = m_ref[...]
        m_row = jnp.max(m_lane, axis=-1, keepdims=True)            # (tn, 1)
        s_row = jnp.sum(s_ref[...] * jnp.exp(m_lane - m_row),
                        axis=-1, keepdims=True)                    # (tn, 1)
        lse_ref[...] = m_row + jnp.log(s_row)


def focal_loss(logits, target, *, gamma=0.0, eps=1e-07, tn=512, tc=None):
    """Pallas FocalLoss forward.

    logits: [N, C] float32 or bfloat16 (bf16 is the fast path: it halves the
            HBM stream, which is the only traffic that matters; in-kernel math
            stays f32).  target: [N] int.
    """
    del eps  # defined by the torch module but unused in its forward
    N, C = logits.shape
    itemsize = jnp.dtype(logits.dtype).itemsize

    # Target-logit gather stays in the wrapper: O(N) bytes vs the O(N*C) stream.
    tgt = jnp.take_along_axis(
        logits, target[:, None].astype(jnp.int32), axis=-1)[:, 0]
    tgt = tgt.astype(jnp.float32)

    # --- row tile: multiple of 32; guarantee >= 2 row tiles when N > 32 so the
    # "parallel" row axis spans both v7x TensorCores (no effect on v5e/v6e). ---
    n_rows = _round_up(N, 32)
    tn_eff = min(_round_up(tn, 32), n_rows)
    if n_rows > 32 and _round_up(N, tn_eff) // tn_eff < 2:
        tn_eff = min(tn_eff, _round_up((N + 1) // 2, 32))
    n_pad = _round_up(N, tn_eff)

    # --- class tile: dtype-aware default, capped so the double buffer stays
    # v7x-friendly (<= ~24 MiB). ---
    if tc is None:
        tc = 8192 if itemsize <= 2 else 4096
    tc_eff = _round_up(min(tc, _round_up(C, 128)), 128)
    max_db = 24 << 20
    tc_cap = max(128, (max_db // (2 * tn_eff * itemsize)) // 128 * 128)
    tc_eff = min(tc_eff, tc_cap)
    c_pad = _round_up(C, tc_eff)

    # Pad classes with a large negative fill (no LSE contribution); pad rows
    # with zeros (their LSE is dropped before the mean).
    x = logits
    if c_pad != C:
        x = jnp.pad(x, ((0, 0), (0, c_pad - C)), constant_values=_NEG_FILL)
    if n_pad != N:
        x = jnp.pad(x, ((0, n_pad - N), (0, 0)))

    # VMEM budget: double-buffered logits tile + lane-padded output block +
    # the two (tn, 128) f32 scratch accumulators.  Cap generation-aware.
    need = 2 * tn_eff * tc_eff * itemsize + 4 * tn_eff * 128 * 4
    try:
        vmem_cap = int(pltpu.get_tpu_info().vmem_capacity_bytes)
    except Exception:
        vmem_cap = 64 << 20
    vmem_limit = int(max(need + (2 << 20), min(need + (8 << 20), vmem_cap // 2)))

    lse = pl.pallas_call(
        _lse_kernel,
        out_shape=jax.ShapeDtypeStruct((n_pad, 1), jnp.float32),
        grid_spec=pltpu.PrefetchScalarGridSpec(
            num_scalar_prefetch=0,
            grid=(n_pad // tn_eff, c_pad // tc_eff),
            in_specs=[
                pl.BlockSpec((tn_eff, tc_eff), lambda i, j: (i, j)),   # logits
            ],
            out_specs=pl.BlockSpec((tn_eff, 1), lambda i, j: (i, 0)),  # per-row LSE
            scratch_shapes=[
                pltpu.VMEM((tn_eff, 128), jnp.float32),   # per-lane running max
                pltpu.VMEM((tn_eff, 128), jnp.float32),   # per-lane running exp-sum
            ],
        ),
        compiler_params=pltpu.CompilerParams(
            dimension_semantics=("parallel", "arbitrary"),
            vmem_limit_bytes=vmem_limit,
        ),
    )(x)

    # Scalar focal transform on the *mean* CE (matches the torch module).
    logp = jnp.mean(lse[:N, 0] - tgt)
    if float(gamma) == 0.0:
        return logp
    p = jnp.exp(-logp)
    return jnp.maximum(1.0 - p, 0.0) ** float(gamma) * logp


def focal_loss_ref(logits, target, *, gamma=0.0):
    """Pure-JAX reference mirroring torch.nn.CrossEntropyLoss + focal wrap."""
    x = logits.astype(jnp.float32)
    lse = jax.scipy.special.logsumexp(x, axis=-1)
    tgt = jnp.take_along_axis(x, target[:, None].astype(jnp.int32), axis=-1)[:, 0]
    logp = jnp.mean(lse - tgt)
    p = jnp.exp(-logp)
    return (1.0 - p) ** gamma * logp


if __name__ == "__main__":
    key = jax.random.PRNGKey(0)
    k1, k2, k3, k4 = jax.random.split(key, 4)
    ok = True

    def _check(name, got, want, rtol, atol):
        global ok
        if not jnp.allclose(got, want, rtol=rtol, atol=atol):
            ok = False
            print(f"MISMATCH {name}: got {got}, want {want}")

    # Case 1: small batch, single class tile (3 lane-groups inside one tile).
    N, C = 16, 384
    logits = jax.random.normal(k1, (N, C), dtype=jnp.float32) * 3.0
    target = jax.random.randint(k2, (N,), 0, C, dtype=jnp.int32)
    for gamma in (0.0, 2.0):
        got = jax.block_until_ready(focal_loss(logits, target, gamma=gamma))
        want = jax.block_until_ready(focal_loss_ref(logits, target, gamma=gamma))
        _check(f"gamma={gamma}", got, want, 1e-5, 1e-5)

    # Case 2: two row tiles (N=48 -> 2 x 32) and three class tiles (online LSE
    # streaming across tiles).
    N2, C2 = 48, 384
    logits2 = jax.random.normal(k3, (N2, C2), dtype=jnp.float32) * 3.0
    target2 = jax.random.randint(k4, (N2,), 0, C2, dtype=jnp.int32)
    got = jax.block_until_ready(focal_loss(logits2, target2, gamma=2.0, tc=128))
    want = jax.block_until_ready(focal_loss_ref(logits2, target2, gamma=2.0))
    _check("row+class tiled", got, want, 1e-5, 1e-5)

    # Case 3: bf16 logits fast path (in-kernel math stays f32).
    logits_bf16 = logits2.astype(jnp.bfloat16)
    got = jax.block_until_ready(focal_loss(logits_bf16, target2, gamma=2.0, tc=128))
    want = jax.block_until_ready(focal_loss_ref(logits_bf16, target2, gamma=2.0))
    _check("bf16", got, want, 1e-3, 1e-3)

    if ok:
        print("KERNEL_OK")
</pallas_src>

<mosaic_0001>
module attributes {stable_mosaic.version = 11 : i64} {
  func.func @_lse_kernel(%arg0: i32, %arg1: i32, %arg2: memref<32x384xf32, #tpu.memory_space<vmem>>, %arg3: memref<32x1xf32, #tpu.memory_space<vmem>>, %arg4: memref<32x128xf32, #tpu.memory_space<vmem>>, %arg5: memref<32x128xf32, #tpu.memory_space<vmem>>) attributes {dimension_semantics = [#tpu.dimension_semantics<parallel>, #tpu.dimension_semantics<arbitrary>], iteration_bounds = array<i64: 1, 1>, scalar_prefetch = 0 : i64, scratch_operands = 2 : i64, tpu.core_type = #tpu.core_type<tc>, window_params = [{transform_indices = @transform_0, window_bounds = array<i64: 32, 384>}, {transform_indices = @transform_1, window_bounds = array<i64: 32, 1>}]} {
    %c0_i32 = arith.constant 0 : i32
    %0 = arith.cmpi eq, %arg1, %c0_i32 : i32
    %1 = arith.extui %0 : i1 to i32
    %c0_i32_0 = arith.constant 0 : i32
    %2 = arith.cmpi ne, %1, %c0_i32_0 : i32
    scf.if %2 {
      %cst = arith.constant 0xFF800000 : f32
      %31 = vector.broadcast %cst : f32 to vector<32x128xf32>
      %c0_20 = arith.constant 0 : index
      %c0_21 = arith.constant 0 : index
      %32 = vector.load %arg4[%c0_20, %c0_21] : memref<32x128xf32, #tpu.memory_space<vmem>>, vector<32x128xf32>
      tpu.vector_store %arg4[%c0_20, %c0_21], %31 {strides = array<i32>} : memref<32x128xf32, #tpu.memory_space<vmem>>, vector<32x128xf32>,
      %cst_22 = arith.constant 0.000000e+00 : f32
      %33 = vector.broadcast %cst_22 : f32 to vector<32x128xf32>
      %c0_23 = arith.constant 0 : index
      %c0_24 = arith.constant 0 : index
      %34 = vector.load %arg5[%c0_23, %c0_24] : memref<32x128xf32, #tpu.memory_space<vmem>>, vector<32x128xf32>
      tpu.vector_store %arg5[%c0_23, %c0_24], %33 {strides = array<i32>} : memref<32x128xf32, #tpu.memory_space<vmem>>, vector<32x128xf32>,
    } else {
    }
    %c0 = arith.constant 0 : index
    %c0_1 = arith.constant 0 : index
    %3 = vector.load %arg2[%c0, %c0_1] : memref<32x384xf32, #tpu.memory_space<vmem>>, vector<32x128xf32>
    %c0_2 = arith.constant 0 : index
    %c128 = arith.constant 128 : index
    %4 = vector.load %arg2[%c0_2, %c128] : memref<32x384xf32, #tpu.memory_space<vmem>>, vector<32x128xf32>
    %5 = arith.maximumf %3, %4 : vector<32x128xf32>
    %c0_3 = arith.constant 0 : index
    %c256 = arith.constant 256 : index
    %6 = vector.load %arg2[%c0_3, %c256] : memref<32x384xf32, #tpu.memory_space<vmem>>, vector<32x128xf32>
    %7 = arith.maximumf %5, %6 : vector<32x128xf32>
    %c0_4 = arith.constant 0 : index
    %c0_5 = arith.constant 0 : index
    %8 = vector.load %arg4[%c0_4, %c0_5] : memref<32x128xf32, #tpu.memory_space<vmem>>, vector<32x128xf32>
    %9 = arith.maximumf %8, %7 : vector<32x128xf32>
    %c0_6 = arith.constant 0 : index
    %c0_7 = arith.constant 0 : index
    %10 = vector.load %arg5[%c0_6, %c0_7] : memref<32x128xf32, #tpu.memory_space<vmem>>, vector<32x128xf32>
    %11 = arith.subf %8, %9 : vector<32x128xf32>
    %12 = math.exp %11 : vector<32x128xf32>
    %13 = arith.mulf %10, %12 : vector<32x128xf32>
    %c0_8 = arith.constant 0 : index
    %c0_9 = arith.constant 0 : index
    %14 = vector.load %arg2[%c0_8, %c0_9] : memref<32x384xf32, #tpu.memory_space<vmem>>, vector<32x128xf32>
    %15 = arith.subf %14, %9 : vector<32x128xf32>
    %16 = math.exp %15 : vector<32x128xf32>
    %17 = arith.addf %13, %16 : vector<32x128xf32>
    %c0_10 = arith.constant 0 : index
    %c128_11 = arith.constant 128 : index
    %18 = vector.load %arg2[%c0_10, %c128_11] : memref<32x384xf32, #tpu.memory_space<vmem>>, vector<32x128xf32>
    %19 = arith.subf %18, %9 : vector<32x128xf32>
    %20 = math.exp %19 : vector<32x128xf32>
    %21 = arith.addf %17, %20 : vector<32x128xf32>
    %c0_12 = arith.constant 0 : index
    %c256_13 = arith.constant 256 : index
    %22 = vector.load %arg2[%c0_12, %c256_13] : memref<32x384xf32, #tpu.memory_space<vmem>>, vector<32x128xf32>
    %23 = arith.subf %22, %9 : vector<32x128xf32>
    %24 = math.exp %23 : vector<32x128xf32>
    %25 = arith.addf %21, %24 : vector<32x128xf32>
    %c0_14 = arith.constant 0 : index
    %c0_15 = arith.constant 0 : index
    %26 = vector.load %arg5[%c0_14, %c0_15] : memref<32x128xf32, #tpu.memory_space<vmem>>, vector<32x128xf32>
    tpu.vector_store %arg5[%c0_14, %c0_15], %25 {strides = array<i32>} : memref<32x128xf32, #tpu.memory_space<vmem>>, vector<32x128xf32>,
    %c0_16 = arith.constant 0 : index
    %c0_17 = arith.constant 0 : index
    %27 = vector.load %arg4[%c0_16, %c0_17] : memref<32x128xf32, #tpu.memory_space<vmem>>, vector<32x128xf32>
    tpu.vector_store %arg4[%c0_16, %c0_17], %9 {strides = array<i32>} : memref<32x128xf32, #tpu.memory_space<vmem>>, vector<32x128xf32>,
    %c0_i32_18 = arith.constant 0 : i32
    %28 = arith.cmpi eq, %arg1, %c0_i32_18 : i32
    %29 = arith.extui %28 : i1 to i32
    %c0_i32_19 = arith.constant 0 : i32
    %30 = arith.cmpi ne, %29, %c0_i32_19 : i32
    scf.if %30 {
      %c0_20 = arith.constant 0 : index
      %c0_21 = arith.constant 0 : index
      %31 = vector.load %arg4[%c0_20, %c0_21] : memref<32x128xf32, #tpu.memory_space<vmem>>, vector<32x128xf32>
      %cst = arith.constant dense<0xFF800000> : vector<32xf32>
      %32 = vector.multi_reduction <maximumf>, %31, %cst [1] : vector<32x128xf32> to vector<32xf32>
      %33 = vector.shape_cast %32 : vector<32xf32> to vector<32x1xf32>
      %c0_22 = arith.constant 0 : index
      %c0_23 = arith.constant 0 : index
      %34 = vector.load %arg5[%c0_22, %c0_23] : memref<32x128xf32, #tpu.memory_space<vmem>>, vector<32x128xf32>
      %35 = vector.broadcast %33 : vector<32x1xf32> to vector<32x128xf32>
      %36 = arith.subf %31, %35 : vector<32x128xf32>
      %37 = math.exp %36 : vector<32x128xf32>
      %38 = arith.mulf %34, %37 : vector<32x128xf32>
      %cst_24 = arith.constant dense<0.000000e+00> : vector<32xf32>
      %39 = vector.multi_reduction <add>, %38, %cst_24 [1] : vector<32x128xf32> to vector<32xf32>
      %40 = vector.shape_cast %39 : vector<32xf32> to vector<32x1xf32>
      %41 = math.log %40 : vector<32x1xf32>
      %42 = arith.addf %33, %41 : vector<32x1xf32>
      %c0_25 = arith.constant 0 : index
      %c0_26 = arith.constant 0 : index
      %43 = vector.load %arg3[%c0_25, %c0_26] : memref<32x1xf32, #tpu.memory_space<vmem>>, vector<32x1xf32>
      tpu.vector_store %arg3[%c0_25, %c0_26], %42 {strides = array<i32>} : memref<32x1xf32, #tpu.memory_space<vmem>>, vector<32x1xf32>,
    } else {
    }
    return
  }
  func.func @transform_0(%arg0: i32, %arg1: i32) -> (i32, i32) {
    %c0_i32 = arith.constant 0 : i32
    return %arg0, %arg1 : i32, i32
  }
  func.func @transform_1(%arg0: i32, %arg1: i32) -> (i32, i32) {
    %c0_i32 = arith.constant 0 : i32
    %c0_i32_0 = arith.constant 0 : i32
    return %arg0, %c0_i32 : i32, i32
  }
}

</mosaic_0001>

<bundles_post_ra>
// kernel: tpu_custom_call.1
= control target key start
LH: loop header
LB: loop body
LE: loop exit
PB: predicated region body
PF: predicated region fallthrough
CT: control target
= control target key end

     0   :  { %6 = vsyncpa [#allocation5], 0  ;;  %s278_s6 = smov [#allocation4]   ;;  %s347_s0 = inlined_call_operand.hbm [shape: f32[32,384], index: 0, kind: input, shape index: {}]   ;;  %s348_s1 = inlined_call_operand.vmem [shape: f32[32,1], index: 1, kind: output, shape index: {}]  }
   0x1   :  { %s12_s7 = sshll.u32 %s278_s6, 4  ;;  %s254_s10 = scalar_lea.hbm %s347_s0, 1536  ;;  %s13_s7 = int_to_ptr.vmem [resolvable:$true] %s12_s7 }
   0x2   :  { %p255_p0 = scmp.ne.s32.totalorder %s347_s0, %s254_s10  ;;  %p258_p1 = scmp.lt.u32.totalorder %s254_s10, %s347_s0 }
   0x4   :  { %p260_p2 = pnand %p258_p1, %p255_p0 }
   0x6   :  { %263 = shalt.err (!%p260_p2)
}
   0x7   :  { %s264_s15 = scalar_lea.vmem %s13_s7, 1536  ;;  %p269_p4 = scmp.lt.s32.totalorder %s13_s7, %s13_s7 }
   0x8   :  { %p265_p3 = scmp.ne.s32.totalorder %s13_s7, %s264_s15  ;;  %p270_p5 = scmp.lt.s32.totalorder %s264_s15, %s264_s15 }
   0xa   :  { %p271_p6 = por %p270_p5, %p269_p4 }
   0xc   :  { %p272_p7 = pnand %p271_p6, %p265_p3 }
   0xe   :  { %275 = shalt.err (!%p272_p7)
}
   0xf   :  { %s279_s16 = smov 384   ;;  %s280_s17 = smov 24  }
  0x10   :  { %18 = dma.hbm_to_vmem [thread:$0]  %s347_s0, 1536, %s13_s7, [#allocation5], %s279_s16, %s279_s16, %s280_s17  }
  0x11   :  { %276 = dma.done.wait [#allocation5], 1536  }
  0x12   :  { %277 = vsyncadd [#allocation5], 4294965760  ;;  %v34_v0 = vld [vmem:[#allocation4] sm:$0xff]  ;;  %v38_v1 = vld [vmem:[#allocation4 + $0x8] sm:$0xff]  ;;  %vm193_vm0 = vcmask 7168  }
  0x13   :  { %v46_v2 = vld [vmem:[#allocation4 + $0x10] sm:$0xff]  ;;  %v42_v3 = vmax.f32 %v34_v0, %v38_v1  ;;  %v40_v5 = vld [vmem:[#allocation4 + $0x38] sm:$0xff]  ;;  %v48_v6 = vld [vmem:[#allocation4 + $0x40] sm:$0xff] }
  0x14   :  { %v36_v4 = vld [vmem:[#allocation4 + $0x30] sm:$0xff]  ;;  %v35_v8 = vld [vmem:[#allocation4 + $0x18] sm:$0xff]  ;;  %v39_v9 = vld [vmem:[#allocation4 + $0x20] sm:$0xff] }
  0x15   :  { %v44_v7 = vmax.f32 %v36_v4, %v40_v5  ;;  %v47_v10 = vld [vmem:[#allocation4 + $0x28] sm:$0xff]  ;;  %v303_v11 = vmax.f32 %v42_v3, %v46_v2  ;;  %v43_v12 = vmax.f32 %v35_v8, %v39_v9  ;;  %v41_v14 = vld [vmem:[#allocation4 + $0x50] sm:$0xff]  ;;  %v49_v15 = vld [vmem:[#allocation4 + $0x58] sm:$0xff] }
  0x16   :  { %v37_v13 = vld [vmem:[#allocation4 + $0x48] sm:$0xff] }
  0x17   :  { %v305_v16 = vmax.f32 %v44_v7, %v48_v6  ;;  %v45_v17 = vmax.f32 %v37_v13, %v41_v14  ;;  %145 = vmax.xlane.f32.xlu0 %v303_v11  ;;  %v308_v18 = vmax.f32 %v43_v12, %v47_v10  ;;  %v66_v20 = vsub.f32 -inf, %v303_v11 }
  0x18   :  { %v82_v22 = vsub.f32 %v34_v0, %v303_v11  ;;  %v98_v24 = vsub.f32 %v38_v1, %v303_v11  ;;  %v114_v28 = vsub.f32 %v46_v2, %v303_v11 }
  0x19   :  { %149 = vmax.xlane.f32.xlu1 %v305_v16  ;;  %v311_v19 = vmax.f32 %v45_v17, %v49_v15  ;;  %v70_v21 = vmul.f32 1.442695, %v66_v20  ;;  %v67_v25 = vsub.f32 -inf, %v308_v18  ;;  %v68_v26 = vsub.f32 -inf, %v305_v16 }
  0x1a   :  { %v86_v23 = vmul.f32 1.442695, %v82_v22  ;;  %v102_v27 = vmul.f32 1.442695, %v98_v24  ;;  %v83_v30 = vsub.f32 %v35_v8, %v308_v18  ;;  %v84_v31 = vsub.f32 %v36_v4, %v305_v16 }
  0x1b   :  { %147 = vmax.xlane.f32.xlu0 %v308_v18  ;;  %206 = vpow2.f32 %v70_v21  ;;  %v72_v29 = vmul.f32 1.442695, %v67_v25  ;;  %v118_v32 = vmul.f32 1.442695, %v114_v28  ;;  %v99_v33 = vsub.f32 %v39_v9, %v308_v18 }
  0x1c   :  { %208 = vpow2.f32 %v86_v23  ;;  %v100_v34 = vsub.f32 %v40_v5, %v305_v16  ;;  %v88_v35 = vmul.f32 1.442695, %v83_v30  ;;  %v74_v36 = vmul.f32 1.442695, %v68_v26 }
  0x1d   :  { %151 = vmax.xlane.f32.xlu1 %v311_v19  ;;  %210 = vpow2.f32 %v102_v27  ;;  %v104_v37 = vmul.f32 1.442695, %v99_v33  ;;  %v115_v38 = vsub.f32 %v47_v10, %v308_v18  ;;  %v69_v39 = vsub.f32 -inf, %v311_v19 }
  0x1e   :  { %212 = vpow2.f32 %v72_v29  ;;  %v90_v40 = vmul.f32 1.442695, %v84_v31  ;;  %v116_v41 = vsub.f32 %v48_v6, %v305_v16  ;;  %v85_v42 = vsub.f32 %v37_v13, %v311_v19 }
  0x1f   :  { %214 = vpow2.f32 %v118_v32  ;;  %v120_v43 = vmul.f32 1.442695, %v115_v38  ;;  %v106_v44 = vmul.f32 1.442695, %v100_v34  ;;  %v101_v45 = vsub.f32 %v41_v14, %v311_v19 }
  0x20   :  { %216 = vpow2.f32 %v88_v35  ;;  %v122_v46 = vmul.f32 1.442695, %v116_v41  ;;  %v76_v48 = vmul.f32 1.442695, %v69_v39  ;;  %v117_v49 = vsub.f32 %v49_v15, %v311_v19 }
  0x21   :  { %218 = vpow2.f32 %v104_v37  ;;  %v92_v51 = vmul.f32 1.442695, %v85_v42  ;;  %v108_v53 = vmul.f32 1.442695, %v101_v45 }
  0x22   :  { %220 = vpow2.f32 %v74_v36  ;;  %v124_v56 = vmul.f32 1.442695, %v117_v49 }
  0x23   :  { %222 = vpow2.f32 %v120_v43 }
  0x24   :  { %224 = vpow2.f32 %v90_v40 }
  0x25   :  { %v207_v47 = vpop.eup %206  ;;  %226 = vpow2.f32 %v106_v44 }
  0x26   :  { %v78_v50 = vmul.f32 0.0, %v207_v47  ;;  %v209_v52 = vpop.eup %208  ;;  %228 = vpow2.f32 %v122_v46 }
  0x27   :  { %v211_v55 = vpop.eup %210  ;;  %230 = vpow2.f32 %v76_v48 }
  0x28   :  { %v94_v54 = vadd.f32 %v209_v52, %v78_v50  ;;  %v213_v57 = vpop.eup %212  ;;  %232 = vpow2.f32 %v92_v51 }
  0x29   :  { %v215_v59 = vpop.eup %214  ;;  %v79_v60 = vmul.f32 0.0, %v213_v57  ;;  %234 = vpow2.f32 %v108_v53 }
  0x2a   :  { %v110_v58 = vadd.f32 %v211_v55, %v94_v54  ;;  %v217_v61 = vpop.eup %216  ;;  %236 = vpow2.f32 %v124_v56 }
  0x2b   :  { %v219_v63 = vpop.eup %218  ;;  %v95_v0 = vadd.f32 %v217_v61, %v79_v60 }
  0x2c   :  { %v126_v62 = vadd.f32 %v215_v59, %v110_v58  ;;  %v221_v1 = vpop.eup %220 }
  0x2d   :  { %v223_v2 = vpop.eup %222  ;;  %v111_v3 = vadd.f32 %v219_v63, %v95_v0  ;;  %v80_v4 = vmul.f32 0.0, %v221_v1 }
  0x2e   :  { %v225_v5 = vpop.eup %224 }
  0x2f   :  { %v227_v6 = vpop.eup %226  ;;  %v127_v7 = vadd.f32 %v223_v2, %v111_v3  ;;  %v96_v8 = vadd.f32 %v225_v5, %v80_v4 }
  0x30   :  { %v229_v9 = vpop.eup %228 }
  0x31   :  { %v231_v10 = vpop.eup %230  ;;  %v112_v12 = vadd.f32 %v227_v6, %v96_v8 }
  0x32   :  { %v233_v13 = vpop.eup %232  ;;  %v81_v14 = vmul.f32 0.0, %v231_v10 }
  0x33   :  { %v235_v15 = vpop.eup %234  ;;  %v128_v17 = vadd.f32 %v229_v9, %v112_v12 }
  0x34   :  { %v97_v20 = vadd.f32 %v233_v13, %v81_v14  ;;  %v237_v21 = vpop.eup %236 }
  0x36   :  { %v113_v22 = vadd.f32 %v235_v15, %v97_v20 }
  0x38   :  { %v129_v23 = vadd.f32 %v237_v21, %v113_v22 }
  0xa4   :  { %v146_v24 = vpop.xlane.xlu0 %145 }
  0xa5   :  { %v157_v25 = vsub.f32 %v303_v11, %v146_v24 }
  0xa6   :  { %v150_v26 = vpop.xlane.xlu1 %149 }
  0xa7   :  { %v159_v27 = vsub.f32 %v305_v16, %v150_v26  ;;  %v161_v28 = vmul.f32 1.442695, %v157_v25 }
  0xa8   :  { %v148_v30 = vpop.xlane.xlu0 %147 }
  0xa9   :  { %v165_v29 = vmul.f32 1.442695, %v159_v27  ;;  %238 = vpow2.f32 %v161_v28  ;;  %v158_v31 = vsub.f32 %v308_v18, %v148_v30 }
  0xaa   :  { %v152_v32 = vpop.xlane.xlu1 %151 }
  0xab   :  { %240 = vpow2.f32 %v165_v29  ;;  %v160_v33 = vsub.f32 %v311_v19, %v152_v32  ;;  %v163_v34 = vmul.f32 1.442695, %v158_v31 }
  0xad   :  { %v167_v35 = vmul.f32 1.442695, %v160_v33  ;;  %242 = vpow2.f32 %v163_v34 }
  0xaf   :  { %244 = vpow2.f32 %v167_v35 }
  0xb3   :  { %v239_v36 = vpop.eup %238 }
  0xb4   :  { %v169_v11 = vmul.f32 %v239_v36, %v126_v62 }
  0xb5   :  { %v241_v37 = vpop.eup %240 }
  0xb6   :  { %173 = vadd.xlane.f32.xlu0 %v169_v11  ;;  %v171_v38 = vmul.f32 %v241_v37, %v128_v17 }
  0xb7   :  { %v243_v16 = vpop.eup %242 }
  0xb8   :  { %v170_v40 = vmul.f32 %v243_v16, %v127_v7 }
  0xb9   :  { %v245_v39 = vpop.eup %244 }
  0xba   :  { %175 = vadd.xlane.f32.xlu1 %v170_v40  ;;  %177 = vadd.xlane.f32.xlu0 %v171_v38  ;;  %v172_v41 = vmul.f32 %v245_v39, %v129_v23 }
  0xbe   :  { %179 = vadd.xlane.f32.xlu1 %v172_v41 }
 0x143   :  { %v174_v18 = vpop.xlane.xlu0 %173 }
 0x144   :  { %246 = vlog2.f32 %v174_v18 }
 0x147   :  { %v176_v42 = vpop.xlane.xlu1 %175  ;;  %v178_v19 = vpop.xlane.xlu0 %177 }
 0x148   :  { %248 = vlog2.f32 %v176_v42 }
 0x149   :  { %250 = vlog2.f32 %v178_v19 }
 0x14b   :  { %v180_v43 = vpop.xlane.xlu1 %179 }
 0x14c   :  { %252 = vlog2.f32 %v180_v43 }
 0x14e   :  { %v247_v44 = vpop.eup %246 }
 0x14f   :  { %v182_v45 = vmul.f32 0.6931472, %v247_v44 }
 0x151   :  { %v189_v46 = vadd.f32 %v182_v45, %v146_v24 }
 0x152   :  { %v249_v47 = vpop.eup %248 }
 0x153   :  { %v251_v48 = vpop.eup %250  ;;  %194 = vst.msk [vmem:[%s348_s1] sm:$0xff] %vm193_vm0, %v189_v46  ;;  %v184_v49 = vmul.f32 0.6931472, %v249_v47 }
 0x154   :  { %v186_v50 = vmul.f32 0.6931472, %v251_v48 }
 0x155   :  { %v190_v51 = vadd.f32 %v184_v49, %v148_v30 }
 0x156   :  { %v253_v52 = vpop.eup %252  ;;  %v191_v53 = vadd.f32 %v186_v50, %v150_v26 }
 0x157   :  { %195 = vst.msk [vmem:[%s348_s1 + $0x8] sm:$0xff] %vm193_vm0, %v190_v51  ;;  %v188_v54 = vmul.f32 0.6931472, %v253_v52 }
 0x158   :  { %196 = vst.msk [vmem:[%s348_s1 + $0x10] sm:$0xff] %vm193_vm0, %v191_v53 }
 0x159   :  { %v192_v55 = vadd.f32 %v188_v54, %v152_v32 }
 0x15b   :  { %197 = vst.msk [vmem:[%s348_s1 + $0x18] sm:$0xff] %vm193_vm0, %v192_v55 }
 0x15c   :  { %202 = vsyncpa [#allocation5], 1 }

</bundles_post_ra>
